<compile_context>
chip_gen: v6e
topology: v6e:2x2x1
jax: 0.10.0
libtpu: 0.0.40
codegen_flags: <defaults>
</compile_context>

<pallas_src>
import jax
import jax.numpy as jnp
from jax.experimental import pallas as pl
from jax.experimental.pallas import tpu as pltpu


def film_kernel(gamma_ref, beta_ref, x_ref, o_ref):
    # gamma_ref / beta_ref: (TR, 1) ; x_ref / o_ref: (TR, T_HW)
    o_ref[...] = (gamma_ref[...] * x_ref[...] + beta_ref[...]).astype(o_ref.dtype)


def _choose_tile(dim, max_tile, quantum):
    """Full extent if it fits, otherwise the largest multiple of `quantum`
    not exceeding `max_tile`."""
    if dim <= max_tile:
        return dim
    return max((max_tile // quantum) * quantum, quantum)


def film_block_rand(x, lang_emb, w_gamma, b_gamma, w_beta, b_beta):
    """x: (B, C, H, W), lang_emb: (B, L).
    w_gamma/w_beta: (C, L) (PyTorch nn.Linear layout), b_*: (C,)."""
    B, C, H, W = x.shape
    HW = H * W
    R = B * C

    # --- Hoisted + fused projections: one (B, L) @ (L, 2C) matmul in JAX ---
    w_cat = jnp.concatenate([w_gamma, w_beta], axis=0)        # (2C, L)
    b_cat = jnp.concatenate([b_gamma, b_beta], axis=0)        # (2C,)
    gb = jnp.dot(lang_emb, w_cat.T,
                 preferred_element_type=jnp.float32) + b_cat  # (B, 2C)
    gamma = gb[:, :C].reshape(R, 1)                           # per-row gamma
    beta = gb[:, C:].reshape(R, 1)                            # per-row beta

    # --- Sublane/lane-dense layout: (B*C, HW) ---
    x_flat = x.reshape(R, HW)

    # Tile sizes: rows in multiples of 8, lanes in multiples of 128.
    # 256 x 2048 f32 = 2 MiB per block -> (2 in + 2 out buffers) = 8 MiB,
    # comfortably under the v7x 32 MiB scoped-VMEM default (and v5e/v6e).
    tr = _choose_tile(R, 256, 8)
    ts = _choose_tile(HW, 2048, 128)
    grid = (pl.cdiv(R, tr), pl.cdiv(HW, ts))

    out = pl.pallas_call(
        film_kernel,
        out_shape=jax.ShapeDtypeStruct((R, HW), x.dtype),
        grid_spec=pltpu.PrefetchScalarGridSpec(
            num_scalar_prefetch=0,
            grid=grid,
            in_specs=[
                pl.BlockSpec((tr, 1), lambda r, s: (r, 0)),    # gamma (per row)
                pl.BlockSpec((tr, 1), lambda r, s: (r, 0)),    # beta  (per row)
                pl.BlockSpec((tr, ts), lambda r, s: (r, s)),   # x tile
            ],
            out_specs=pl.BlockSpec((tr, ts), lambda r, s: (r, s)),
        ),
        compiler_params=pltpu.CompilerParams(
            dimension_semantics=("parallel", "parallel")),
    )(gamma, beta, x_flat)

    return out.reshape(B, C, H, W)


if __name__ == "__main__":
    # Small shapes consistent with the module's forward pass.
    B, C, H, W = 2, 4, 16, 16      # x: NCHW
    L = 32                         # lang_emb_dim

    key = jax.random.PRNGKey(0)
    kx, kl, kwg, kbg, kwb, kbb = jax.random.split(key, 6)

    x = jax.random.normal(kx, (B, C, H, W), dtype=jnp.float32)
    lang_emb = jax.random.normal(kl, (B, L), dtype=jnp.float32)

    # nn.Linear-style parameters: weight (C, L), bias (C,).
    bound = 1.0 / jnp.sqrt(L)
    w_gamma = jax.random.uniform(kwg, (C, L), minval=-bound, maxval=bound,
                                 dtype=jnp.float32)
    b_gamma = jax.random.uniform(kbg, (C,), minval=-bound, maxval=bound,
                                 dtype=jnp.float32)
    w_beta = jax.random.uniform(kwb, (C, L), minval=-bound, maxval=bound,
                                dtype=jnp.float32)
    b_beta = jax.random.uniform(kbb, (C,), minval=-bound, maxval=bound,
                                dtype=jnp.float32)

    out = film_block_rand(x, lang_emb, w_gamma, b_gamma, w_beta, b_beta)
    out = jax.block_until_ready(out)

    # Pure-JAX reference (same semantics as the PyTorch forward).
    gamma_ref = lang_emb @ w_gamma.T + b_gamma        # (B, C)
    beta_ref = lang_emb @ w_beta.T + b_beta           # (B, C)
    ref = gamma_ref[:, :, None, None] * x + beta_ref[:, :, None, None]

    assert out.shape == (B, C, H, W)
    assert jnp.allclose(out, ref, atol=1e-5, rtol=1e-5)

    print("KERNEL_OK")
</pallas_src>

<mosaic_0001>
module attributes {stable_mosaic.version = 11 : i64} {
  func.func @film_kernel(%arg0: i32, %arg1: i32, %arg2: memref<8x1xf32, #tpu.memory_space<vmem>>, %arg3: memref<8x1xf32, #tpu.memory_space<vmem>>, %arg4: memref<8x256xf32, #tpu.memory_space<vmem>>, %arg5: memref<8x256xf32, #tpu.memory_space<vmem>>) attributes {dimension_semantics = [#tpu.dimension_semantics<parallel>, #tpu.dimension_semantics<parallel>], iteration_bounds = array<i64: 1, 1>, scalar_prefetch = 0 : i64, scratch_operands = 0 : i64, tpu.core_type = #tpu.core_type<tc>, window_params = [{transform_indices = @transform_0, window_bounds = array<i64: 8, 1>}, {transform_indices = @transform_1, window_bounds = array<i64: 8, 1>}, {transform_indices = @transform_2, window_bounds = array<i64: 8, 256>}, {transform_indices = @transform_3, window_bounds = array<i64: 8, 256>}]} {
    %c0 = arith.constant 0 : index
    %c0_0 = arith.constant 0 : index
    %0 = vector.load %arg2[%c0, %c0_0] : memref<8x1xf32, #tpu.memory_space<vmem>>, vector<8x1xf32>
    %c0_1 = arith.constant 0 : index
    %c0_2 = arith.constant 0 : index
    %1 = vector.load %arg4[%c0_1, %c0_2] : memref<8x256xf32, #tpu.memory_space<vmem>>, vector<8x256xf32>
    %2 = vector.broadcast %0 : vector<8x1xf32> to vector<8x256xf32>
    %3 = arith.mulf %2, %1 : vector<8x256xf32>
    %c0_3 = arith.constant 0 : index
    %c0_4 = arith.constant 0 : index
    %4 = vector.load %arg3[%c0_3, %c0_4] : memref<8x1xf32, #tpu.memory_space<vmem>>, vector<8x1xf32>
    %5 = vector.broadcast %4 : vector<8x1xf32> to vector<8x256xf32>
    %6 = arith.addf %3, %5 : vector<8x256xf32>
    %c0_5 = arith.constant 0 : index
    %c0_6 = arith.constant 0 : index
    %7 = vector.load %arg5[%c0_5, %c0_6] : memref<8x256xf32, #tpu.memory_space<vmem>>, vector<8x256xf32>
    tpu.vector_store %arg5[%c0_5, %c0_6], %6 {strides = array<i32>} : memref<8x256xf32, #tpu.memory_space<vmem>>, vector<8x256xf32>,
    return
  }
  func.func @transform_0(%arg0: i32, %arg1: i32) -> (i32, i32) {
    %c0_i32 = arith.constant 0 : i32
    %c0_i32_0 = arith.constant 0 : i32
    return %arg0, %c0_i32 : i32, i32
  }
  func.func @transform_1(%arg0: i32, %arg1: i32) -> (i32, i32) {
    %c0_i32 = arith.constant 0 : i32
    %c0_i32_0 = arith.constant 0 : i32
    return %arg0, %c0_i32 : i32, i32
  }
  func.func @transform_2(%arg0: i32, %arg1: i32) -> (i32, i32) {
    %c0_i32 = arith.constant 0 : i32
    return %arg0, %arg1 : i32, i32
  }
  func.func @transform_3(%arg0: i32, %arg1: i32) -> (i32, i32) {
    %c0_i32 = arith.constant 0 : i32
    return %arg0, %arg1 : i32, i32
  }
}

</mosaic_0001>

<bundles_post_ra>
// kernel: tpu_custom_call.1
= control target key start
LH: loop header
LB: loop body
LE: loop exit
PB: predicated region body
PF: predicated region fallthrough
CT: control target
= control target key end

     0   :  { %v74_v1 = vmov 0   ;;  %s111_s0 = inlined_call_operand.vmem [shape: f32[8,1], index: 0, kind: input, shape index: {}]   ;;  %s112_s1 = inlined_call_operand.vmem [shape: f32[8,1], index: 1, kind: input, shape index: {}]   ;;  %s113_s2 = inlined_call_operand.vmem [shape: f32[8,256], index: 2, kind: input, shape index: {}]   ;;  %s114_s3 = inlined_call_operand.hbm [shape: f32[8,256], index: 3, kind: output, shape index: {}]  }
   0x1   :  { %v15_v0 = vld [vmem:[%s111_s0] sm:$0xff]  ;;  %51 = vset.pattern.permute.xlu0 %v74_v1 }
   0x2   :  { %8 = vsyncpa [#allocation3], 0  ;;  %20 = vperm.xlu0 %51, %v15_v0   ;;  %v25_v2 = vld [vmem:[%s112_s1] sm:$0xff]  ;;  %v17_v4 = vld [vmem:[%s113_s2 + $0x8] sm:$0xff]  ;;  %s75_s20 = smov [#allocation2]  }
   0x3   :  { %v16_v3 = vld [vmem:[%s113_s2] sm:$0xff]  ;;  %s41_s0 = sshll.u32 %s75_s20, 4  ;;  %s42_s0 = int_to_ptr.vmem [resolvable:$true] %s41_s0 }
   0x4   :  { %s52_s1 = scalar_lea.vmem %s42_s0, 256  ;;  %p57_p1 = scmp.lt.s32.totalorder %s42_s0, %s42_s0 }
   0x5   :  { %p53_p0 = scmp.ne.s32.totalorder %s42_s0, %s52_s1  ;;  %p58_p2 = scmp.lt.s32.totalorder %s52_s1, %s52_s1 }
   0x6   :  { %28 = vperm.xlu0 %51, %v25_v2  }
   0x7   :  { %p59_p3 = por %p58_p2, %p57_p1 }
   0x9   :  { %p60_p4 = pnand %p59_p3, %p53_p0 }
  0x7d   :  { %v21_v5 = vpop.permute.xlu0 %20 }
  0x7e   :  { %v23_v6 = vmul.f32 %v21_v5, %v16_v3  ;;  %v24_v7 = vmul.f32 %v21_v5, %v17_v4 }
  0x81   :  { %v29_v8 = vpop.permute.xlu0 %28 }
  0x82   :  { %v31_v9 = vadd.f32 %v29_v8, %v23_v6  ;;  %v32_v10 = vadd.f32 %v29_v8, %v24_v7 }
  0x84   :  { %33 = vst [vmem:[#allocation2] sm:$0xff] %v31_v9  ;;  %34 = vst [vmem:[#allocation2 + $0x8] sm:$0xff] %v32_v10 }
  0x85   :  { %63 = shalt.err (!%p60_p4)
}
  0x86   :  { %44 = dma.vmem_to_hbm [thread:$0]  %s42_s0, 256, %s114_s3, [#allocation3]  }
  0x87   :  { %72 = dma.done.wait [#allocation3], 256  }
  0x88   :  { %73 = vsyncadd [#allocation3], 4294967040 }
  0x89   :  { %48 = vsyncpa [#allocation3], 1 }

</bundles_post_ra>
